<compile_context>
chip_gen: v7x
topology: tpu7x:2x2x1
jax: 0.10.0
libtpu: 0.0.40
codegen_flags: <defaults>
</compile_context>

<pallas_src>
import functools

import jax
import jax.numpy as jnp
from jax.experimental import pallas as pl
from jax.experimental.pallas import tpu as pltpu


_OUT_ROWS = 8  # output slab rows: 0 = q1, 1 = q2, 2 = (q1 - q2)/2, 3..7 = 0


def _round_up(x, m):
    return ((x + m - 1) // m) * m


def _ensemble_critic_kernel(
    s_ref, a_ref,                 # (state_dim, TB), (action_dim, TB) — batch on lanes
    ws_ref, wa_ref, ba_ref,       # fused layer 1 (transposed, split state/action) + bias
    wb_ref, bb_ref,               # fused layer 2 (transposed, block-diagonal) + bias
    wc_ref, bc_ref,               # fused layer 3 -> 8 output rows (std row baked in) + bias
    out_ref,                      # (8, TB)
):
    s = s_ref[...]                                     # (state_dim, TB)
    a = a_ref[...]                                     # (action_dim, TB)

    # Fused layer 1: h = W_s^T s + W_a^T a + b   (concat folded into split contractions)
    h = jnp.dot(ws_ref[...], s, preferred_element_type=jnp.float32)       # (HP, TB)
    if a_ref.shape[0] == 1:
        # K=1 contraction as a VPU broadcast outer product (no MXU push).
        h = h + wa_ref[...] * a
    else:
        h = h + jnp.dot(wa_ref[...], a, preferred_element_type=jnp.float32)
    h = jnp.maximum(h + ba_ref[...], 0.0)              # bias (HP, 1) broadcasts over lanes

    # Fused layer 2: block-diagonal keeps the two Q-heads independent.
    h = jnp.dot(wb_ref[...], h, preferred_element_type=jnp.float32) + bb_ref[...]
    h = jnp.maximum(h, 0.0)                            # (HP, TB)

    # Fused layer 3 straight into the lane-dense (8, TB) output slab.
    # Row 0 = q1, row 1 = q2, row 2 = (q1 - q2)/2, rows 3..7 = 0 (zero-padded weights/bias).
    out_ref[...] = jnp.dot(wc_ref[...], h, preferred_element_type=jnp.float32) + bc_ref[...]


def init_params(key, state_dim=3, action_dim=1, latent_dim=10):
    """Raw per-layer params mirroring nn.Linear default init.

    Weights stored as (in_features, out_features), biases as (1, out_features).
    """
    in_dim = state_dim + action_dim

    def linear(key, fan_in, fan_out):
        kw, kb = jax.random.split(key)
        bound = 1.0 / jnp.sqrt(jnp.float32(fan_in))
        w = jax.random.uniform(kw, (fan_in, fan_out), jnp.float32, -bound, bound)
        b = jax.random.uniform(kb, (1, fan_out), jnp.float32, -bound, bound)
        return w, b

    keys = jax.random.split(key, 6)
    w1, b1 = linear(keys[0], in_dim, latent_dim)
    w2, b2 = linear(keys[1], latent_dim, latent_dim)
    w3, b3 = linear(keys[2], latent_dim, 1)
    w4, b4 = linear(keys[3], in_dim, latent_dim)
    w5, b5 = linear(keys[4], latent_dim, latent_dim)
    w6, b6 = linear(keys[5], latent_dim, 1)
    return (w1, b1, w2, b2, w3, b3, w4, b4, w5, b5, w6, b6)


def pack_params(params, state_dim):
    """One-time fusion/packing of the 12 per-layer params into 7 transposed kernel params.

    Head 1 (l1/l2/l3) occupies hidden rows [0, L); head 2 (l4/l5/l6) rows [L, 2L);
    rows [2L, HP) are zero padding (kept exactly zero so they never contaminate the
    ReLUs or the output rows).
    """
    (w1, b1, w2, b2, w3, b3, w4, b4, w5, b5, w6, b6) = params
    latent_dim = w2.shape[0]
    two_l = 2 * latent_dim
    hp = _round_up(two_l, 8)          # padded hidden dim for clean sublane layout
    in_dim = w1.shape[0]

    # Layer 1 (transposed): rows = hidden units, cols = input features.
    w_a_t = jnp.zeros((hp, in_dim), jnp.float32)
    w_a_t = w_a_t.at[:latent_dim, :].set(w1.T)
    w_a_t = w_a_t.at[latent_dim:two_l, :].set(w4.T)
    w_s_t = w_a_t[:, :state_dim]                                  # (HP, state_dim)
    w_act_t = w_a_t[:, state_dim:]                                # (HP, action_dim)
    b_a_t = jnp.zeros((hp, 1), jnp.float32)
    b_a_t = b_a_t.at[:latent_dim, 0].set(b1.reshape(-1))
    b_a_t = b_a_t.at[latent_dim:two_l, 0].set(b4.reshape(-1))

    # Layer 2 (transposed, block-diagonal so the heads stay independent).
    w_b_t = jnp.zeros((hp, hp), jnp.float32)
    w_b_t = w_b_t.at[:latent_dim, :latent_dim].set(w2.T)
    w_b_t = w_b_t.at[latent_dim:two_l, latent_dim:two_l].set(w5.T)
    b_b_t = jnp.zeros((hp, 1), jnp.float32)
    b_b_t = b_b_t.at[:latent_dim, 0].set(b2.reshape(-1))
    b_b_t = b_b_t.at[latent_dim:two_l, 0].set(b5.reshape(-1))

    # Layer 3 (transposed): 8 output rows. Row 2 carries the std epilogue
    # (q1 - q2)/2 baked into the weights; the wrapper takes the abs.
    w_c_t = jnp.zeros((_OUT_ROWS, hp), jnp.float32)
    w_c_t = w_c_t.at[0, :latent_dim].set(w3.reshape(-1))
    w_c_t = w_c_t.at[1, latent_dim:two_l].set(w6.reshape(-1))
    w_c_t = w_c_t.at[2, :latent_dim].set(0.5 * w3.reshape(-1))
    w_c_t = w_c_t.at[2, latent_dim:two_l].set(-0.5 * w6.reshape(-1))
    b_c_t = jnp.zeros((_OUT_ROWS, 1), jnp.float32)
    b_c_t = b_c_t.at[0, 0].set(b3.reshape(-1)[0])
    b_c_t = b_c_t.at[1, 0].set(b6.reshape(-1)[0])
    b_c_t = b_c_t.at[2, 0].set(0.5 * (b3.reshape(-1)[0] - b6.reshape(-1)[0]))

    return (w_s_t, w_act_t, b_a_t, w_b_t, b_b_t, w_c_t, b_c_t)


@functools.partial(jax.jit, static_argnames=("with_var", "tile_b"))
def ensemble_critic_forward(state, action, packed_params, with_var=False, tile_b=2048):
    """Pallas-backed EnsembleCritic.forward(state, action, with_var)."""
    w_s_t, w_act_t, b_a_t, w_b_t, b_b_t, w_c_t, b_c_t = packed_params

    state = state.astype(jnp.float32)
    action = action.astype(jnp.float32)
    batch = state.shape[0]
    state_dim = state.shape[1]
    action_dim = action.shape[1]
    hp = w_b_t.shape[0]

    # Batch rides the lane axis, so the batch tile must be a multiple of 128.
    b128 = _round_up(batch, 128)
    tb = max(128, min(_round_up(tile_b, 128), b128))
    # Guarantee >= 2 grid steps when the batch allows it, so the "parallel" axis
    # shards across both TensorCores on v7x (harmless on v5e/v6e).
    if b128 // tb < 2 and b128 >= 256:
        tb = _round_up(pl.cdiv(b128, 2), 128)
    b_pad = _round_up(batch, tb)
    grid = (b_pad // tb,)

    # Transposed, lane-dense inputs (features on sublanes, batch on lanes).
    state_t = jnp.pad(state.T, ((0, 0), (0, b_pad - batch)))
    action_t = jnp.pad(action.T, ((0, 0), (0, b_pad - batch)))

    const = lambda i: (0, 0)  # weights/biases stay VMEM-resident across batch tiles

    in_dim = state_dim + action_dim
    flops = 2 * b_pad * (hp * in_dim + hp * hp + _OUT_ROWS * hp)
    bytes_accessed = 4 * (
        b_pad * (in_dim + _OUT_ROWS)                        # streamed inputs + output slab
        + hp * (in_dim + hp + 2) + _OUT_ROWS * (hp + 1)     # resident weights/biases
    )

    out = pl.pallas_call(
        _ensemble_critic_kernel,
        out_shape=jax.ShapeDtypeStruct((_OUT_ROWS, b_pad), jnp.float32),
        grid_spec=pltpu.PrefetchScalarGridSpec(
            num_scalar_prefetch=0,
            grid=grid,
            in_specs=[
                pl.BlockSpec((state_dim, tb), lambda i: (0, i)),
                pl.BlockSpec((action_dim, tb), lambda i: (0, i)),
                pl.BlockSpec(w_s_t.shape, const),
                pl.BlockSpec(w_act_t.shape, const),
                pl.BlockSpec(b_a_t.shape, const),
                pl.BlockSpec(w_b_t.shape, const),
                pl.BlockSpec(b_b_t.shape, const),
                pl.BlockSpec(w_c_t.shape, const),
                pl.BlockSpec(b_c_t.shape, const),
            ],
            out_specs=pl.BlockSpec((_OUT_ROWS, tb), lambda i: (0, i)),
        ),
        compiler_params=pltpu.CompilerParams(
            dimension_semantics=("parallel",),
        ),
        cost_estimate=pl.CostEstimate(
            flops=flops, transcendentals=0, bytes_accessed=bytes_accessed),
    )(state_t, action_t, w_s_t, w_act_t, b_a_t, w_b_t, b_b_t, w_c_t, b_c_t)

    q1 = out[0, :batch][:, None]                      # (B, 1)
    q2 = out[1, :batch][:, None]                      # (B, 1)
    all_qs = jnp.stack([q1, q2], axis=0)              # (2, B, 1)
    if with_var:
        std_q = jnp.abs(out[2, :batch])[:, None]      # |q1-q2|/2 == std(unbiased=False)
        return all_qs, std_q
    return all_qs


def _reference_forward(state, action, params, with_var=False):
    """Pure-JAX reference (unfused), mirrors the PyTorch module."""
    sa = jnp.concatenate([state, action], axis=1).astype(jnp.float32)
    (w1, b1, w2, b2, w3, b3, w4, b4, w5, b5, w6, b6) = params

    h = jax.nn.relu(sa @ w1 + b1)
    h = jax.nn.relu(h @ w2 + b2)
    q1 = h @ w3 + b3

    g = jax.nn.relu(sa @ w4 + b4)
    g = jax.nn.relu(g @ w5 + b5)
    q2 = g @ w6 + b6

    all_qs = jnp.stack([q1, q2], axis=0)
    if with_var:
        std_q = jnp.std(all_qs, axis=0)                # unbiased=False
        return all_qs, std_q
    return all_qs


if __name__ == "__main__":
    state_dim, action_dim, latent_dim = 3, 1, 10

    key = jax.random.PRNGKey(0)
    k_params, k_state, k_action = jax.random.split(key, 3)

    params = init_params(k_params, state_dim, action_dim, latent_dim)
    packed = pack_params(params, state_dim)

    # Small batch, with_var=True path.
    batch = 8
    state = jax.random.normal(k_state, (batch, state_dim), jnp.float32)
    action = jax.random.normal(k_action, (batch, action_dim), jnp.float32)

    all_qs, std_q = ensemble_critic_forward(state, action, packed, with_var=True)
    jax.block_until_ready((all_qs, std_q))

    ref_all_qs, ref_std_q = _reference_forward(state, action, params, with_var=True)
    assert all_qs.shape == (2, batch, 1)
    assert std_q.shape == (batch, 1)
    assert jnp.allclose(all_qs, ref_all_qs, atol=1e-5, rtol=1e-5)
    assert jnp.allclose(std_q, ref_std_q, atol=1e-5, rtol=1e-5)

    # with_var=False path.
    all_qs_only = ensemble_critic_forward(state, action, packed, with_var=False)
    jax.block_until_ready(all_qs_only)
    assert jnp.allclose(all_qs_only, ref_all_qs, atol=1e-5, rtol=1e-5)

    # Non-multiple-of-tile batch that also exercises >= 2 grid steps + padding.
    batch2 = 200
    k_s2, k_a2 = jax.random.split(jax.random.PRNGKey(1))
    state2 = jax.random.normal(k_s2, (batch2, state_dim), jnp.float32)
    action2 = jax.random.normal(k_a2, (batch2, action_dim), jnp.float32)
    all_qs2, std_q2 = ensemble_critic_forward(state2, action2, packed, with_var=True)
    jax.block_until_ready((all_qs2, std_q2))
    ref_all_qs2, ref_std_q2 = _reference_forward(state2, action2, params, with_var=True)
    assert jnp.allclose(all_qs2, ref_all_qs2, atol=1e-5, rtol=1e-5)
    assert jnp.allclose(std_q2, ref_std_q2, atol=1e-5, rtol=1e-5)

    print("KERNEL_OK")
</pallas_src>

<mosaic_0001>
module attributes {stable_mosaic.version = 11 : i64} {
  func.func @_ensemble_critic_kernel(%arg0: i32, %arg1: memref<3x128xf32, #tpu.memory_space<vmem>>, %arg2: memref<1x128xf32, #tpu.memory_space<vmem>>, %arg3: memref<24x3xf32, #tpu.memory_space<vmem>>, %arg4: memref<24x1xf32, #tpu.memory_space<vmem>>, %arg5: memref<24x1xf32, #tpu.memory_space<vmem>>, %arg6: memref<24x24xf32, #tpu.memory_space<vmem>>, %arg7: memref<24x1xf32, #tpu.memory_space<vmem>>, %arg8: memref<8x24xf32, #tpu.memory_space<vmem>>, %arg9: memref<8x1xf32, #tpu.memory_space<vmem>>, %arg10: memref<8x128xf32, #tpu.memory_space<vmem>>) attributes {dimension_semantics = [#tpu.dimension_semantics<parallel>], iteration_bounds = array<i64: 1>, scalar_prefetch = 0 : i64, scratch_operands = 0 : i64, tpu.core_type = #tpu.core_type<tc>, window_params = [{transform_indices = @transform_0, window_bounds = array<i64: 3, 128>}, {transform_indices = @transform_1, window_bounds = array<i64: 1, 128>}, {pipeline_mode = #tpu.pipeline_mode<synchronous>, transform_indices = @transform_2, window_bounds = array<i64: 24, 3>}, {pipeline_mode = #tpu.pipeline_mode<synchronous>, transform_indices = @transform_3, window_bounds = array<i64: 24, 1>}, {pipeline_mode = #tpu.pipeline_mode<synchronous>, transform_indices = @transform_4, window_bounds = array<i64: 24, 1>}, {pipeline_mode = #tpu.pipeline_mode<synchronous>, transform_indices = @transform_5, window_bounds = array<i64: 24, 24>}, {pipeline_mode = #tpu.pipeline_mode<synchronous>, transform_indices = @transform_6, window_bounds = array<i64: 24, 1>}, {pipeline_mode = #tpu.pipeline_mode<synchronous>, transform_indices = @transform_7, window_bounds = array<i64: 8, 24>}, {pipeline_mode = #tpu.pipeline_mode<synchronous>, transform_indices = @transform_8, window_bounds = array<i64: 8, 1>}, {transform_indices = @transform_9, window_bounds = array<i64: 8, 128>}]} {
    %c0 = arith.constant 0 : index
    %c0_0 = arith.constant 0 : index
    %0 = vector.load %arg1[%c0, %c0_0] : memref<3x128xf32, #tpu.memory_space<vmem>>, vector<3x128xf32>
    %c0_1 = arith.constant 0 : index
    %c0_2 = arith.constant 0 : index
    %1 = vector.load %arg2[%c0_1, %c0_2] : memref<1x128xf32, #tpu.memory_space<vmem>>, vector<1x128xf32>
    %c0_3 = arith.constant 0 : index
    %c0_4 = arith.constant 0 : index
    %2 = vector.load %arg3[%c0_3, %c0_4] : memref<24x3xf32, #tpu.memory_space<vmem>>, vector<24x3xf32>
    %cst = arith.constant dense<0.000000e+00> : vector<24x128xf32>
    %3 = tpu.matmul %2, %0, %cst {dimension_numbers = #tpu.dot_dimension_numbers<[1], [0], [0], [1], [0, 0, 1, 1], [], []>} : vector<24x3xf32>, vector<3x128xf32>, vector<24x128xf32> -> vector<24x128xf32>
    %c0_5 = arith.constant 0 : index
    %c0_6 = arith.constant 0 : index
    %4 = vector.load %arg4[%c0_5, %c0_6] : memref<24x1xf32, #tpu.memory_space<vmem>>, vector<24x1xf32>
    %5 = vector.broadcast %4 : vector<24x1xf32> to vector<24x128xf32>
    %6 = vector.broadcast %1 : vector<1x128xf32> to vector<24x128xf32>
    %7 = arith.mulf %5, %6 : vector<24x128xf32>
    %8 = arith.addf %3, %7 : vector<24x128xf32>
    %c0_7 = arith.constant 0 : index
    %c0_8 = arith.constant 0 : index
    %9 = vector.load %arg5[%c0_7, %c0_8] : memref<24x1xf32, #tpu.memory_space<vmem>>, vector<24x1xf32>
    %10 = vector.broadcast %9 : vector<24x1xf32> to vector<24x128xf32>
    %11 = arith.addf %8, %10 : vector<24x128xf32>
    %cst_9 = arith.constant 0.000000e+00 : f32
    %12 = vector.broadcast %cst_9 : f32 to vector<24x128xf32>
    %13 = arith.maximumf %11, %12 : vector<24x128xf32>
    %c0_10 = arith.constant 0 : index
    %c0_11 = arith.constant 0 : index
    %14 = vector.load %arg6[%c0_10, %c0_11] : memref<24x24xf32, #tpu.memory_space<vmem>>, vector<24x24xf32>
    %cst_12 = arith.constant dense<0.000000e+00> : vector<24x128xf32>
    %15 = tpu.matmul %14, %13, %cst_12 {dimension_numbers = #tpu.dot_dimension_numbers<[1], [0], [0], [1], [0, 0, 1, 1], [], []>} : vector<24x24xf32>, vector<24x128xf32>, vector<24x128xf32> -> vector<24x128xf32>
    %c0_13 = arith.constant 0 : index
    %c0_14 = arith.constant 0 : index
    %16 = vector.load %arg7[%c0_13, %c0_14] : memref<24x1xf32, #tpu.memory_space<vmem>>, vector<24x1xf32>
    %17 = vector.broadcast %16 : vector<24x1xf32> to vector<24x128xf32>
    %18 = arith.addf %15, %17 : vector<24x128xf32>
    %cst_15 = arith.constant 0.000000e+00 : f32
    %19 = vector.broadcast %cst_15 : f32 to vector<24x128xf32>
    %20 = arith.maximumf %18, %19 : vector<24x128xf32>
    %c0_16 = arith.constant 0 : index
    %c0_17 = arith.constant 0 : index
    %21 = vector.load %arg8[%c0_16, %c0_17] : memref<8x24xf32, #tpu.memory_space<vmem>>, vector<8x24xf32>
    %cst_18 = arith.constant dense<0.000000e+00> : vector<8x128xf32>
    %22 = tpu.matmul %21, %20, %cst_18 {dimension_numbers = #tpu.dot_dimension_numbers<[1], [0], [0], [1], [0, 0, 1, 1], [], []>} : vector<8x24xf32>, vector<24x128xf32>, vector<8x128xf32> -> vector<8x128xf32>
    %c0_19 = arith.constant 0 : index
    %c0_20 = arith.constant 0 : index
    %23 = vector.load %arg9[%c0_19, %c0_20] : memref<8x1xf32, #tpu.memory_space<vmem>>, vector<8x1xf32>
    %24 = vector.broadcast %23 : vector<8x1xf32> to vector<8x128xf32>
    %25 = arith.addf %22, %24 : vector<8x128xf32>
    %c0_21 = arith.constant 0 : index
    %c0_22 = arith.constant 0 : index
    %26 = vector.load %arg10[%c0_21, %c0_22] : memref<8x128xf32, #tpu.memory_space<vmem>>, vector<8x128xf32>
    tpu.vector_store %arg10[%c0_21, %c0_22], %25 {strides = array<i32>} : memref<8x128xf32, #tpu.memory_space<vmem>>, vector<8x128xf32>,
    return
  }
  func.func @transform_0(%arg0: i32) -> (i32, i32) {
    %c0_i32 = arith.constant 0 : i32
    %c0_i32_0 = arith.constant 0 : i32
    return %c0_i32, %arg0 : i32, i32
  }
  func.func @transform_1(%arg0: i32) -> (i32, i32) {
    %c0_i32 = arith.constant 0 : i32
    %c0_i32_0 = arith.constant 0 : i32
    return %c0_i32, %arg0 : i32, i32
  }
  func.func @transform_2(%arg0: i32) -> (i32, i32) {
    %c0_i32 = arith.constant 0 : i32
    %c0_i32_0 = arith.constant 0 : i32
    %c0_i32_1 = arith.constant 0 : i32
    return %c0_i32, %c0_i32_0 : i32, i32
  }
  func.func @transform_3(%arg0: i32) -> (i32, i32) {
    %c0_i32 = arith.constant 0 : i32
    %c0_i32_0 = arith.constant 0 : i32
    %c0_i32_1 = arith.constant 0 : i32
    return %c0_i32, %c0_i32_0 : i32, i32
  }
  func.func @transform_4(%arg0: i32) -> (i32, i32) {
    %c0_i32 = arith.constant 0 : i32
    %c0_i32_0 = arith.constant 0 : i32
    %c0_i32_1 = arith.constant 0 : i32
    return %c0_i32, %c0_i32_0 : i32, i32
  }
  func.func @transform_5(%arg0: i32) -> (i32, i32) {
    %c0_i32 = arith.constant 0 : i32
    %c0_i32_0 = arith.constant 0 : i32
    %c0_i32_1 = arith.constant 0 : i32
    return %c0_i32, %c0_i32_0 : i32, i32
  }
  func.func @transform_6(%arg0: i32) -> (i32, i32) {
    %c0_i32 = arith.constant 0 : i32
    %c0_i32_0 = arith.constant 0 : i32
    %c0_i32_1 = arith.constant 0 : i32
    return %c0_i32, %c0_i32_0 : i32, i32
  }
  func.func @transform_7(%arg0: i32) -> (i32, i32) {
    %c0_i32 = arith.constant 0 : i32
    %c0_i32_0 = arith.constant 0 : i32
    %c0_i32_1 = arith.constant 0 : i32
    return %c0_i32, %c0_i32_0 : i32, i32
  }
  func.func @transform_8(%arg0: i32) -> (i32, i32) {
    %c0_i32 = arith.constant 0 : i32
    %c0_i32_0 = arith.constant 0 : i32
    %c0_i32_1 = arith.constant 0 : i32
    return %c0_i32, %c0_i32_0 : i32, i32
  }
  func.func @transform_9(%arg0: i32) -> (i32, i32) {
    %c0_i32 = arith.constant 0 : i32
    %c0_i32_0 = arith.constant 0 : i32
    return %c0_i32, %arg0 : i32, i32
  }
}

</mosaic_0001>

<bundles_post_ra>
// kernel: ensemble_critic_forward.1
= control target key start
LH: loop header
LB: loop body
LE: loop exit
PB: predicated region body
PF: predicated region fallthrough
CT: control target
= control target key end

     0   :  { %vm74_vm0 = vcmask 1042432   ;;  %vm64_vm1 = vcmask 23552   ;;  %v451_v0 = vmov 0.0   ;;  %vm452_vm2 = vmmov 0   ;;  %s589_s0 = inlined_call_operand.vmem [shape: f32[3,128], index: 0, kind: input, shape index: {}]   ;;  %s590_s2 = inlined_call_operand.vmem [shape: f32[24,3], index: 2, kind: input, shape index: {}]   ;;  %s591_s3 = inlined_call_operand.vmem [shape: f32[24,1], index: 3, kind: input, shape index: {}]   ;;  %s592_s4 = inlined_call_operand.vmem [shape: f32[24,1], index: 4, kind: input, shape index: {}]   ;;  %s593_s6 = inlined_call_operand.vmem [shape: f32[24,1], index: 6, kind: input, shape index: {}]   ;;  %s594_s8 = inlined_call_operand.vmem [shape: f32[8,1], index: 8, kind: input, shape index: {}]   ;;  %s595_s1 = inlined_call_operand.vmem [shape: f32[1,128], index: 1, kind: input, shape index: {}]   ;;  %s596_s5 = inlined_call_operand.vmem [shape: f32[24,24], index: 5, kind: input, shape index: {}]   ;;  %s597_s7 = inlined_call_operand.vmem [shape: f32[8,24], index: 7, kind: input, shape index: {}]   ;;  %s598_s9 = inlined_call_operand.vmem [shape: f32[8,128], index: 9, kind: output, shape index: {}]  }
   0x1   :  { %404 = vmatprep.subr.mxu0 %v451_v0  ;;  %v32_v1 = vld [vmem:[%s589_s0] sm:$0x7]  ;;  %406 = vmatprep.mubr.msk.f32.mxu0 %vm452_vm2, %v451_v0  ;;  %v453_v3 = vmov 0   ;;  %v35_v6 = vld [vmem:[%s590_s2 + $0x8] sm:$0xff]  ;;  %v36_v9 = vld [vmem:[%s590_s2 + $0x10] sm:$0xff]  ;;  %v454_v16 = vmov 0.0|0.0  }
   0x2   :  { %v34_v2 = vld [vmem:[%s590_s2] sm:$0xff]  ;;  %405 = vmatpush3.msk.msra.mxu0 %vm74_vm0, %v32_v1  ;;  %449 = vset.pattern.permute.xlu0 %v453_v3  ;;  %v38_v7 = vld [vmem:[%s591_s3 + $0x8] sm:$0xff]  ;;  %v39_v10 = vld [vmem:[%s591_s3 + $0x10] sm:$0xff]  ;;  %vm203_vm3 = vcmask 195584  }
   0x3   :  { %v37_v4 = vld [vmem:[%s591_s3] sm:$0xff]  ;;  %407 = vmatmul.mubr.msk.f32.vlgmr.msra.gmra.mrb[0].mxu0 %vm64_vm1, %v34_v2  ;;  %450 = vset.pattern.permute.xlu1 %v453_v3  ;;  %v159_v8 = vld [vmem:[%s592_s4 + $0x8] sm:$0xff]  ;;  %v160_v11 = vld [vmem:[%s592_s4 + $0x10] sm:$0xff] }
   0x4   :  { %v158_v5 = vld [vmem:[%s592_s4] sm:$0xff]  ;;  %42 = vperm.xlu0 %449, %v37_v4   ;;  %409 = vmatprep.mubr.msk.f32.mxu0 %vm452_vm2, %v451_v0  ;;  %v186_v13 = vld [vmem:[%s593_s6 + $0x8] sm:$0xff]  ;;  %v187_v14 = vld [vmem:[%s593_s6 + $0x10] sm:$0xff] }
   0x5   :  { %163 = vperm.xlu1 %450, %v158_v5   ;;  %421 = vmatprep.mubr.msk.f32.mxu1 %vm452_vm2, %v451_v0  ;;  %v185_v12 = vld [vmem:[%s593_s6] sm:$0xff]  ;;  %v183_v44 = vld [vmem:[%s596_s5 + $0x8] sm:$0xff]  ;;  %v184_v45 = vld [vmem:[%s596_s5 + $0x10] sm:$0xff] }
   0x6   :  { %v297_v15 = vld [vmem:[%s594_s8] sm:$0xff]  ;;  %439 = vmatprep.subr.bf16.mxu1 %v454_v16  ;;  %442 = vmatprep.subr.bf16.mxu0 %v454_v16 }
   0x7   :  { %410 = vmatmul.mubr.msk.f32.gmra.mrb[2].mxu0 %vm64_vm1, %v35_v6  ;;  %v381_v18 = vld [vmem:[%s595_s1] ss:$0 sm:$0xff] }
   0x8   :  { %47 = vperm.xlu0 %449, %v38_v7   ;;  %412 = vmatprep.mubr.msk.f32.mxu0 %vm452_vm2, %v451_v0  ;;  %v182_v43 = vld [vmem:[%s596_s5] sm:$0xff] }
   0x9   :  { %168 = vperm.xlu1 %450, %v159_v8   ;;  %v296_v62 = vld [vmem:[%s597_s7] sm:$0xff] }
   0xb   :  { %413 = vmatmul.mubr.msk.f32.gmra.mrb[4].mxu0 %vm64_vm1, %v36_v9 }
   0xc   :  { %52 = vperm.xlu0 %449, %v39_v10   ;;  %436 = vmatprep.mubr.msk.f32.mxu0 %vm452_vm2, %v451_v0 }
   0xd   :  { %173 = vperm.xlu1 %450, %v160_v11  }
  0x10   :  { %190 = vperm.xlu0 %449, %v185_v12  }
  0x11   :  { %195 = vperm.xlu1 %450, %v186_v13  }
  0x14   :  { %200 = vperm.xlu0 %449, %v187_v14  }
  0x15   :  { %300 = vperm.xlu1 %450, %v297_v15  }
  0x83   :  { %v43_v17 = vpop.permute.xlu0 %42 }
  0x84   :  { %v61_v19 = vmul.f32 %v381_v18, %v43_v17  ;;  %v164_v20 = vpop.permute.xlu1 %163 }
  0x87   :  { %v48_v21 = vpop.permute.xlu0 %47 }
  0x88   :  { %v62_v25 = vmul.f32 %v381_v18, %v48_v21  ;;  %v169_v26 = vpop.permute.xlu1 %168 }
  0x8b   :  { %v53_v31 = vpop.permute.xlu0 %52 }
  0x8c   :  { %v63_v32 = vmul.f32 %v381_v18, %v53_v31  ;;  %v174_v39 = vpop.permute.xlu1 %173 }
  0x8f   :  { %v191_v48 = vpop.permute.xlu0 %190 }
  0x90   :  { %v196_v50 = vpop.permute.xlu1 %195 }
  0x93   :  { %v201_v56 = vpop.permute.xlu0 %200 }
  0x94   :  { %v301_v63 = vpop.permute.xlu1 %300 }
  0xd6   :  { %v144_v22 = vpop.f32.mrb[0].mxu0 }
  0xd7   :  { %v145_v23 = vadd.f32 %v144_v22, %v61_v19  ;;  %v408_v24 = vpop.f32.mrb[1].mxu0 }
  0xd9   :  { %v176_v28 = vadd.f32 %v164_v20, %v145_v23 }
  0xda   :  { %v149_v27 = vpop.f32.mrb[2].mxu0 }
  0xdb   :  { %v150_v29 = vadd.f32 %v149_v27, %v62_v25  ;;  %v411_v30 = vpop.f32.mrb[3].mxu0  ;;  %v179_v35 = vmax.f32 %v176_v28, 0.0 }
  0xdd   :  { %v177_v33 = vadd.f32 %v169_v26, %v150_v29 }
  0xde   :  { %v154_v34 = vpop.f32.mrb[4].mxu0 }
  0xdf   :  { %v180_v36 = vmax.f32 %v177_v33, 0.0  ;;  %v155_v37 = vadd.f32 %v154_v34, %v63_v32  ;;  %v414_v38 = vpop.f32.mrb[5].mxu0 }
  0xe1   :  { %v178_v40 = vadd.f32 %v174_v39, %v155_v37  ;;  %v440_v41 = vpack.c.bf16 %v180_v36, %v179_v35 }
  0xe3   :  { %441 = vmatpush3.bf16.msra.mxu1 %v440_v41  ;;  %v181_v42 = vmax.f32 %v178_v40, 0.0 }
  0xe4   :  { %419 = vmatprep.subr.mxu1 %v451_v0 }
  0xe7   :  { %420 = vmatpush3.msra.mxu1 %v181_v42 }
  0xe8   :  { %422 = vmatmul.mubr.msk.f32.vlgmr.msra.gmra.mrb[0].mxu1 %vm203_vm3, %v182_v43 }
  0xe9   :  { %424 = vmatprep.mubr.msk.f32.mxu1 %vm452_vm2, %v451_v0 }
  0xec   :  { %425 = vmatmul.mubr.msk.f32.gmra.mrb[2].mxu1 %vm203_vm3, %v183_v44 }
  0xed   :  { %427 = vmatprep.mubr.msk.f32.mxu1 %vm452_vm2, %v451_v0 }
  0xf0   :  { %428 = vmatmul.mubr.msk.f32.gmra.mrb[4].mxu1 %vm203_vm3, %v184_v45 }
 0x1bb   :  { %v279_v46 = vpop.f32.mrb[0].mxu1 }
 0x1bc   :  { %v423_v47 = vpop.f32.mrb[1].mxu1  ;;  %v280_v49 = vadd.f32 %v279_v46, %v191_v48 }
 0x1be   :  { %v293_v54 = vmax.f32 %v280_v49, 0.0 }
 0x1bf   :  { %v284_v51 = vpop.f32.mrb[2].mxu1 }
 0x1c0   :  { %v285_v52 = vadd.f32 %v284_v51, %v196_v50  ;;  %v426_v53 = vpop.f32.mrb[3].mxu1 }
 0x1c2   :  { %v294_v55 = vmax.f32 %v285_v52, 0.0 }
 0x1c3   :  { %v289_v57 = vpop.f32.mrb[4].mxu1 }
 0x1c4   :  { %v443_v58 = vpack.c.bf16 %v294_v55, %v293_v54  ;;  %v290_v59 = vadd.f32 %v289_v57, %v201_v56  ;;  %v429_v60 = vpop.f32.mrb[5].mxu1 }
 0x1c6   :  { %444 = vmatpush3.bf16.msra.mxu0 %v443_v58  ;;  %v295_v61 = vmax.f32 %v290_v59, 0.0 }
 0x1c7   :  { %434 = vmatprep.subr.mxu0 %v451_v0 }
 0x1ca   :  { %435 = vmatpush3.msra.mxu0 %v295_v61 }
 0x1cb   :  { %437 = vmatmul.mubr.msk.f32.vlgmr.msra.gmra.mrb[6].mxu0 %vm203_vm3, %v296_v62 }
 0x29e   :  { %v372_v1 = vpop.f32.mrb[6].mxu0 }
 0x29f   :  { %v373_v2 = vadd.f32 %v372_v1, %v301_v63  ;;  %v438_v3 = vpop.f32.mrb[7].mxu0 }
 0x2a1   :  { %376 = vst [vmem:[%s598_s9] sm:$0xff] %v373_v2 }

</bundles_post_ra>
